<compile_context>
chip_gen: v7x
topology: tpu7x:2x2x1
jax: 0.10.0
libtpu: 0.0.40
codegen_flags: <defaults>
</compile_context>

<pallas_src>
import functools

import numpy as np

import jax
import jax.numpy as jnp
from jax.experimental import pallas as pl
from jax.experimental.pallas import tpu as pltpu

EPS = 1e-8  # auraloss STFTLoss default power clamp


def _round_up(a, b):
    return ((a + b - 1) // b) * b


def _frame(x, n_fft, hop):
    """torch.stft-style framing (center=True, reflect pad), frame order permuted.

    Built from contiguous slice+reshape (no gather) when hop | n_fft.  The frame
    order permutation is harmless: every reduction downstream is order invariant.
    x: (N, T) -> frames (N, n_frames, n_fft), n_frames
    """
    N, T = x.shape
    pad = n_fft // 2
    xp = jnp.pad(x, ((0, 0), (pad, pad)), mode="reflect")
    Tp = T + 2 * pad
    n_frames = (Tp - n_fft) // hop + 1
    if n_fft % hop == 0:
        groups = []
        for j in range(n_fft // hop):
            start = j * hop
            m = (Tp - start - n_fft) // n_fft + 1
            if m <= 0:
                continue
            groups.append(xp[:, start:start + m * n_fft].reshape(N, m, n_fft))
        frames = jnp.concatenate(groups, axis=1)
        assert frames.shape[1] == n_frames
    else:
        # TODO(synk): gather fallback for hops that do not divide n_fft (e.g. 1024/120).
        idx = hop * jnp.arange(n_frames)[:, None] + jnp.arange(n_fft)[None, :]
        frames = xp[:, idx]
    return frames, n_frames


def _fused_dft_basis(n_fft, nbh):
    """Hann-window-folded one-sided DFT basis, fused as [real | imag], bf16.

    Each half occupies nbh lanes (real in cols [0:nb), imag in cols [nbh:nbh+nb)),
    zero-padded so the MXU output is lane-dense and the split is lane-aligned.
    Built with numpy so it is a hoisted constant under jit.
    TODO(synk): offer an f32 basis/frames path if loss/gradient fidelity beyond bf16
    quantization of the spectra is required.
    """
    nb = n_fft // 2 + 1
    assert nbh >= nb
    k = np.arange(n_fft, dtype=np.float64)
    f = np.arange(nb, dtype=np.float64)
    win = 0.5 - 0.5 * np.cos(2.0 * np.pi * k / n_fft)  # periodic Hann (torch.hann_window)
    ang = 2.0 * np.pi * np.outer(k, f) / n_fft
    basis = np.zeros((n_fft, 2 * nbh), dtype=np.float32)
    basis[:, :nb] = (win[:, None] * np.cos(ang)).astype(np.float32)
    basis[:, nbh:nbh + nb] = (-win[:, None] * np.sin(ang)).astype(np.float32)
    return jnp.asarray(basis, dtype=jnp.bfloat16)


def _vmem_budgets():
    """(tile_budget_bytes, vmem_limit_bytes), generation-aware (v7x 64 MiB vs 128 MiB)."""
    try:
        cap = int(pltpu.get_tpu_info().vmem_capacity_bytes)
    except Exception:
        cap = 64 * 2**20  # conservative fallback (v7x per-TC)
    tile_budget = min(int(0.40 * cap), 48 * 2**20)
    vmem_limit = min(int(0.75 * cap), 96 * 2**20)
    return tile_budget, vmem_limit


def _choose_tiles(N, n_frames, n_fft, ncols, vmem_budget):
    """Pick (TN, TF): example tile (parallel axis) and frame tile (MXU M dim)."""
    # Prefer >= 2 blocks on the parallel axis so both v7x TensorCores get work.
    TN = N
    for cand in (8, 4, 2, 1):
        if N >= 2 * cand and N % cand == 0:
            TN = cand
            break
    # Large frame tile: target MXU M = 2*TN*TF ~ 3072 (per-grid-step overhead ~0.35us),
    # multiple of 8, bounded by the generation-aware VMEM budget.
    tf = min(_round_up(n_frames, 8), max(8, _round_up(3072 // (2 * TN), 8)))

    def vmem_bytes(t):
        m = 2 * TN * t
        frames_blk = 2 * m * n_fft * 2      # bf16 frames block, double-buffered
        basis_blk = 2 * n_fft * ncols * 2   # bf16 fused basis (headroom for 2 buffers)
        inter = 6 * m * ncols * 4           # f32 matmul result + live elementwise temps
        accs = 3 * 2 * 8 * 128 * 4          # (8, <=128) f32 accumulators
        return frames_blk + basis_blk + inter + accs

    while tf > 8 and vmem_bytes(tf) > vmem_budget:
        tf -= 8
    return TN, tf


def _mrstft_partial_kernel(frames_ref, basis_ref, d2_ref, y2_ref, la_ref, *, packed):
    """One (example-block, frame-tile): fused bf16 DFT matmul + per-bin partial sums.

    frames_ref: (2, TN, TF, n_fft) bf16 — [0]=x ("input") frames, [1]=y ("target") frames
    basis_ref:  (n_fft, ncols) bf16 — [real | imag] window-folded DFT basis
                packed=True  -> ncols=128, real in lanes [0:64), imag in [64:128)
                packed=False -> ncols=2*nbh, lane-aligned halves of width nbh
    d2/y2/la refs: (8, acc_w) f32 per-bin partial sums accumulated over frame tiles:
        d2 = (y_mag - x_mag)^2,  y2 = y_mag^2,  la = |log y_mag - log x_mag|
    """
    @pl.when(pl.program_id(1) == 0)
    def _init():
        d2_ref[...] = jnp.zeros_like(d2_ref)
        y2_ref[...] = jnp.zeros_like(y2_ref)
        la_ref[...] = jnp.zeros_like(la_ref)

    two, tn, tf, n_fft = frames_ref.shape
    ncols = basis_ref.shape[1]
    m = two * tn * tf
    half = tn * tf

    fr = frames_ref[...].reshape(m, n_fft)
    # single fused MXU matmul: x & y frames stacked on rows, [re|im] basis on columns
    z = jnp.dot(fr, basis_ref[...], preferred_element_type=jnp.float32)  # (m, ncols) f32

    if packed:
        # re^2 + im^2 folded with an XLU lane-roll (free slot); lanes >= 64 hold
        # duplicated power and lanes [nb, 64) hold EPS — the wrapper only sums [:, :nb].
        sq = z * z
        p = jnp.maximum(sq + pltpu.roll(sq, ncols // 2, axis=1), EPS)
    else:
        nbh = ncols // 2
        re = z[:, :nbh]
        im = z[:, nbh:]
        p = jnp.maximum(re * re + im * im, EPS)       # auraloss eps-clamped |STFT|^2

    x_pow = p[:half]
    y_pow = p[half:]
    x_mag = jnp.sqrt(x_pow)
    y_mag = jnp.sqrt(y_pow)
    d = y_mag - x_mag                                  # cancellation-safe SC residual
    la = jnp.abs(jnp.log(y_mag / x_mag))               # one log + one div per bin

    w = p.shape[1]
    # per-bin partial sums folded to 8 sublanes -> lane-dense (8, w) accumulators
    d2_ref[...] += jnp.sum((d * d).reshape(half // 8, 8, w), axis=0)
    y2_ref[...] += jnp.sum(y_pow.reshape(half // 8, 8, w), axis=0)
    la_ref[...] += jnp.sum(la.reshape(half // 8, 8, w), axis=0)


def stft_loss_pallas(x, y, n_fft, hop):
    """auraloss.freq.STFTLoss(input=x, target=y) with defaults (sc + log-mag L1)."""
    B, C, T = x.shape
    N = B * C
    nb = n_fft // 2 + 1
    packed = nb <= 64                       # pack [re|im] into one 128-lane group
    nbh = 64 if packed else _round_up(nb, 128)
    ncols = 2 * nbh
    acc_w = 128 if packed else nbh

    fx, n_frames = _frame(x.reshape(N, T), n_fft, hop)
    fy, _ = _frame(y.reshape(N, T), n_fft, hop)
    # cast to bf16 BEFORE pad/stack so the wrapper-side HBM write traffic is halved
    fx = fx.astype(jnp.bfloat16)
    fy = fy.astype(jnp.bfloat16)

    tile_budget, vmem_limit = _vmem_budgets()
    TN, TF = _choose_tiles(N, n_frames, n_fft, ncols, tile_budget)
    Fp = _round_up(n_frames, TF)
    pad_f = Fp - n_frames
    if pad_f:
        fx = jnp.pad(fx, ((0, 0), (0, pad_f), (0, 0)))
        fy = jnp.pad(fy, ((0, 0), (0, pad_f), (0, 0)))
    # TODO(synk): move framing into the kernel (overlapping Element-offset time blocks
    # rebuilt with the hop|n_fft slice+reshape trick) to kill the n_fft/hop-fold
    # frame-overlap HBM traffic; kept in the wrapper here for robust lowering.
    frames = jnp.stack([fx, fy], axis=0)                         # (2, N, Fp, n_fft) bf16
    basis = _fused_dft_basis(n_fft, nbh)                         # (n_fft, ncols) bf16

    NB = N // TN
    grid = (NB, Fp // TF)
    out_sds = jax.ShapeDtypeStruct((8 * NB, acc_w), jnp.float32)

    d2, y2, la = pl.pallas_call(
        functools.partial(_mrstft_partial_kernel, packed=packed),
        out_shape=(out_sds, out_sds, out_sds),
        grid_spec=pltpu.PrefetchScalarGridSpec(
            num_scalar_prefetch=0,
            grid=grid,
            in_specs=[
                pl.BlockSpec((2, TN, TF, n_fft), lambda i, t: (0, i, t, 0)),
                pl.BlockSpec((n_fft, ncols), lambda i, t: (0, 0)),
            ],
            out_specs=(
                pl.BlockSpec((8, acc_w), lambda i, t: (i, 0)),
                pl.BlockSpec((8, acc_w), lambda i, t: (i, 0)),
                pl.BlockSpec((8, acc_w), lambda i, t: (i, 0)),
            ),
        ),
        compiler_params=pltpu.CompilerParams(
            dimension_semantics=("parallel", "arbitrary"),
            vmem_limit_bytes=vmem_limit,
        ),
    )(frames, basis)

    # Finalize on valid bins only ([:, :nb]); padded basis columns / duplicated packed
    # lanes never enter the sum; zero-padded frames contribute exactly 0 to d2/la and
    # exactly EPS per valid bin to y2 (clamped power of an all-zero frame), removed
    # analytically below.
    sc_num = jnp.sum(d2[:, :nb])
    sc_den = jnp.sum(y2[:, :nb]) - EPS * nb * N * pad_f
    la_sum = jnp.sum(la[:, :nb])

    # SpectralConvergenceLoss: single Frobenius ratio over the whole batched tensor.
    sc_loss = jnp.sqrt(jnp.maximum(sc_num, 0.0)) / jnp.sqrt(jnp.maximum(sc_den, 1e-30))
    # STFTMagnitudeLoss(log=True, L1, reduction='mean')
    log_mag_loss = la_sum / (N * n_frames * nb)
    return sc_loss + log_mag_loss


def multi_resolution_stft_loss(x, y, fft_sizes=(64, 128), hop_sizes=(16, 32)):
    """auraloss.freq.MultiResolutionSTFTLoss.forward(input=x, target=y) (small resolutions)."""
    # TODO(synk): a single pallas_call spanning both resolutions would amortize dispatch
    # further for very short clips; kept per-resolution, fused under one jit.
    total = 0.0
    for n_fft, hop in zip(fft_sizes, hop_sizes):
        total = total + stft_loss_pallas(x, y, n_fft, hop)
    return total / len(fft_sizes)


class AuralossLossPallas:
    """JAX/Pallas port of stable_audio_tools AuralossLoss."""

    def __init__(self, loss_module, input_key, target_key, name, weight=1.0, decay=1.0):
        self.loss_module = loss_module
        self.input_key = input_key
        self.target_key = target_key
        self.name = name
        self.decay = float(decay)
        self.master_weight = float(weight)
        self.weight = jnp.asarray(float(weight), jnp.float32)  # register_buffer('weight', ...)

    def decay_weight(self):
        # TODO(synk): stateful buffer mutation kept as Python-side state; with the
        # default decay=1.0 this resets the weight to master_weight (a no-op here).
        if self.decay != 1.0:
            self.weight = self.weight * self.decay
        else:
            self.weight = jnp.asarray(self.master_weight, jnp.float32)

    def __call__(self, info):
        # NOTE: AuralossLoss passes (target, input) to the loss module (swapped vs base class).
        loss = self.loss_module(info[self.target_key], info[self.input_key])
        self.decay_weight()
        return self.weight * loss


if __name__ == "__main__":
    key = jax.random.PRNGKey(0)
    k1, k2 = jax.random.split(key)
    B, C, T = 2, 2, 240  # small audio: batch=2, channels=2, 240 samples
    audio_target = jax.random.normal(k1, (B, C, T), dtype=jnp.float32)
    audio_decoded = audio_target + 0.1 * jax.random.normal(k2, (B, C, T), dtype=jnp.float32)

    loss_fn = AuralossLossPallas(
        jax.jit(multi_resolution_stft_loss),  # one jit: framing, basis & both kernels fused
        input_key="decoded",
        target_key="audio",
        name="mrstft",
        weight=1.0,
    )
    info = {"decoded": audio_decoded, "audio": audio_target}
    loss = loss_fn(info)
    loss = jax.block_until_ready(loss)
    assert loss.shape == () and jnp.isfinite(loss)
    print("KERNEL_OK")
</pallas_src>

<mosaic_0001>
module attributes {stable_mosaic.version = 11 : i64} {
  func.func @_mrstft_partial_kernel(%arg0: i32, %arg1: i32, %arg2: memref<2x2x16x64xbf16, #tpu.memory_space<vmem>>, %arg3: memref<64x128xbf16, #tpu.memory_space<vmem>>, %arg4: memref<8x128xf32, #tpu.memory_space<vmem>>, %arg5: memref<8x128xf32, #tpu.memory_space<vmem>>, %arg6: memref<8x128xf32, #tpu.memory_space<vmem>>) attributes {dimension_semantics = [#tpu.dimension_semantics<parallel>, #tpu.dimension_semantics<arbitrary>], iteration_bounds = array<i64: 2, 1>, scalar_prefetch = 0 : i64, scratch_operands = 0 : i64, tpu.core_type = #tpu.core_type<tc>, window_params = [{transform_indices = @transform_0, window_bounds = array<i64: 2, 2, 16, 64>}, {pipeline_mode = #tpu.pipeline_mode<synchronous>, transform_indices = @transform_1, window_bounds = array<i64: 64, 128>}, {transform_indices = @transform_2, window_bounds = array<i64: 8, 128>}, {transform_indices = @transform_3, window_bounds = array<i64: 8, 128>}, {transform_indices = @transform_4, window_bounds = array<i64: 8, 128>}]} {
    %c0_i32 = arith.constant 0 : i32
    %0 = arith.cmpi eq, %arg1, %c0_i32 : i32
    %1 = arith.extui %0 : i1 to i32
    %c0_i32_0 = arith.constant 0 : i32
    %2 = arith.cmpi ne, %1, %c0_i32_0 : i32
    scf.if %2 {
      %cst_22 = arith.constant 0.000000e+00 : f32
      %36 = vector.broadcast %cst_22 : f32 to vector<8x128xf32>
      %c0_23 = arith.constant 0 : index
      %c0_24 = arith.constant 0 : index
      %37 = vector.load %arg4[%c0_23, %c0_24] : memref<8x128xf32, #tpu.memory_space<vmem>>, vector<8x128xf32>
      tpu.vector_store %arg4[%c0_23, %c0_24], %36 {strides = array<i32>} : memref<8x128xf32, #tpu.memory_space<vmem>>, vector<8x128xf32>,
      %cst_25 = arith.constant 0.000000e+00 : f32
      %38 = vector.broadcast %cst_25 : f32 to vector<8x128xf32>
      %c0_26 = arith.constant 0 : index
      %c0_27 = arith.constant 0 : index
      %39 = vector.load %arg5[%c0_26, %c0_27] : memref<8x128xf32, #tpu.memory_space<vmem>>, vector<8x128xf32>
      tpu.vector_store %arg5[%c0_26, %c0_27], %38 {strides = array<i32>} : memref<8x128xf32, #tpu.memory_space<vmem>>, vector<8x128xf32>,
      %cst_28 = arith.constant 0.000000e+00 : f32
      %40 = vector.broadcast %cst_28 : f32 to vector<8x128xf32>
      %c0_29 = arith.constant 0 : index
      %c0_30 = arith.constant 0 : index
      %41 = vector.load %arg6[%c0_29, %c0_30] : memref<8x128xf32, #tpu.memory_space<vmem>>, vector<8x128xf32>
      tpu.vector_store %arg6[%c0_29, %c0_30], %40 {strides = array<i32>} : memref<8x128xf32, #tpu.memory_space<vmem>>, vector<8x128xf32>,
    } else {
    }
    %c0 = arith.constant 0 : index
    %c0_1 = arith.constant 0 : index
    %c0_2 = arith.constant 0 : index
    %c0_3 = arith.constant 0 : index
    %3 = vector.load %arg2[%c0, %c0_1, %c0_2, %c0_3] : memref<2x2x16x64xbf16, #tpu.memory_space<vmem>>, vector<2x2x16x64xbf16>
    %4 = vector.shape_cast %3 : vector<2x2x16x64xbf16> to vector<64x64xbf16>
    %c0_4 = arith.constant 0 : index
    %c0_5 = arith.constant 0 : index
    %5 = vector.load %arg3[%c0_4, %c0_5] : memref<64x128xbf16, #tpu.memory_space<vmem>>, vector<64x128xbf16>
    %cst = arith.constant dense<0.000000e+00> : vector<64x128xf32>
    %6 = tpu.matmul %4, %5, %cst {dimension_numbers = #tpu.dot_dimension_numbers<[1], [0], [0], [1], [0, 0, 1, 1], [], []>} : vector<64x64xbf16>, vector<64x128xbf16>, vector<64x128xf32> -> vector<64x128xf32>
    %7 = arith.mulf %6, %6 : vector<64x128xf32>
    %c64_i32 = arith.constant 64 : i32
    %8 = tpu.dynamic_rotate %7 by %c64_i32 dim 1 : vector<64x128xf32>, i32 -> vector<64x128xf32>
    %9 = arith.addf %7, %8 : vector<64x128xf32>
    %cst_6 = arith.constant 9.99999993E-9 : f32
    %10 = vector.broadcast %cst_6 : f32 to vector<64x128xf32>
    %11 = arith.maximumf %9, %10 : vector<64x128xf32>
    %12 = vector.extract_strided_slice %11 {offsets = [0, 0], sizes = [32, 128], strides = [1, 1]} : vector<64x128xf32> to vector<32x128xf32>
    %13 = vector.extract_strided_slice %11 {offsets = [32, 0], sizes = [32, 128], strides = [1, 1]} : vector<64x128xf32> to vector<32x128xf32>
    %14 = math.sqrt %12 : vector<32x128xf32>
    %15 = math.sqrt %13 : vector<32x128xf32>
    %16 = arith.subf %15, %14 : vector<32x128xf32>
    %17 = arith.divf %15, %14 : vector<32x128xf32>
    %18 = math.log %17 : vector<32x128xf32>
    %19 = math.absf %18 : vector<32x128xf32>
    %c0_7 = arith.constant 0 : index
    %c0_8 = arith.constant 0 : index
    %20 = vector.load %arg4[%c0_7, %c0_8] : memref<8x128xf32, #tpu.memory_space<vmem>>, vector<8x128xf32>
    %21 = arith.mulf %16, %16 : vector<32x128xf32>
    %22 = vector.shape_cast %21 : vector<32x128xf32> to vector<4x8x128xf32>
    %cst_9 = arith.constant dense<0.000000e+00> : vector<8x128xf32>
    %23 = vector.multi_reduction <add>, %22, %cst_9 [0] : vector<4x8x128xf32> to vector<8x128xf32>
    %24 = arith.addf %20, %23 : vector<8x128xf32>
    %c0_10 = arith.constant 0 : index
    %c0_11 = arith.constant 0 : index
    %25 = vector.load %arg4[%c0_10, %c0_11] : memref<8x128xf32, #tpu.memory_space<vmem>>, vector<8x128xf32>
    tpu.vector_store %arg4[%c0_10, %c0_11], %24 {strides = array<i32>} : memref<8x128xf32, #tpu.memory_space<vmem>>, vector<8x128xf32>,
    %c0_12 = arith.constant 0 : index
    %c0_13 = arith.constant 0 : index
    %26 = vector.load %arg5[%c0_12, %c0_13] : memref<8x128xf32, #tpu.memory_space<vmem>>, vector<8x128xf32>
    %27 = vector.shape_cast %13 : vector<32x128xf32> to vector<4x8x128xf32>
    %cst_14 = arith.constant dense<0.000000e+00> : vector<8x128xf32>
    %28 = vector.multi_reduction <add>, %27, %cst_14 [0] : vector<4x8x128xf32> to vector<8x128xf32>
    %29 = arith.addf %26, %28 : vector<8x128xf32>
    %c0_15 = arith.constant 0 : index
    %c0_16 = arith.constant 0 : index
    %30 = vector.load %arg5[%c0_15, %c0_16] : memref<8x128xf32, #tpu.memory_space<vmem>>, vector<8x128xf32>
    tpu.vector_store %arg5[%c0_15, %c0_16], %29 {strides = array<i32>} : memref<8x128xf32, #tpu.memory_space<vmem>>, vector<8x128xf32>,
    %c0_17 = arith.constant 0 : index
    %c0_18 = arith.constant 0 : index
    %31 = vector.load %arg6[%c0_17, %c0_18] : memref<8x128xf32, #tpu.memory_space<vmem>>, vector<8x128xf32>
    %32 = vector.shape_cast %19 : vector<32x128xf32> to vector<4x8x128xf32>
    %cst_19 = arith.constant dense<0.000000e+00> : vector<8x128xf32>
    %33 = vector.multi_reduction <add>, %32, %cst_19 [0] : vector<4x8x128xf32> to vector<8x128xf32>
    %34 = arith.addf %31, %33 : vector<8x128xf32>
    %c0_20 = arith.constant 0 : index
    %c0_21 = arith.constant 0 : index
    %35 = vector.load %arg6[%c0_20, %c0_21] : memref<8x128xf32, #tpu.memory_space<vmem>>, vector<8x128xf32>
    tpu.vector_store %arg6[%c0_20, %c0_21], %34 {strides = array<i32>} : memref<8x128xf32, #tpu.memory_space<vmem>>, vector<8x128xf32>,
    return
  }
  func.func @transform_0(%arg0: i32, %arg1: i32) -> (i32, i32, i32, i32) {
    %c0_i32 = arith.constant 0 : i32
    %c0_i32_0 = arith.constant 0 : i32
    %c0_i32_1 = arith.constant 0 : i32
    return %c0_i32, %arg0, %arg1, %c0_i32_0 : i32, i32, i32, i32
  }
  func.func @transform_1(%arg0: i32, %arg1: i32) -> (i32, i32) {
    %c0_i32 = arith.constant 0 : i32
    %c0_i32_0 = arith.constant 0 : i32
    %c0_i32_1 = arith.constant 0 : i32
    return %c0_i32, %c0_i32_0 : i32, i32
  }
  func.func @transform_2(%arg0: i32, %arg1: i32) -> (i32, i32) {
    %c0_i32 = arith.constant 0 : i32
    %c0_i32_0 = arith.constant 0 : i32
    return %arg0, %c0_i32 : i32, i32
  }
  func.func @transform_3(%arg0: i32, %arg1: i32) -> (i32, i32) {
    %c0_i32 = arith.constant 0 : i32
    %c0_i32_0 = arith.constant 0 : i32
    return %arg0, %c0_i32 : i32, i32
  }
  func.func @transform_4(%arg0: i32, %arg1: i32) -> (i32, i32) {
    %c0_i32 = arith.constant 0 : i32
    %c0_i32_0 = arith.constant 0 : i32
    return %arg0, %c0_i32 : i32, i32
  }
}

module attributes {stable_mosaic.version = 11 : i64} {
  func.func @_mrstft_partial_kernel(%arg0: i32, %arg1: i32, %arg2: memref<2x2x8x128xbf16, #tpu.memory_space<vmem>>, %arg3: memref<128x256xbf16, #tpu.memory_space<vmem>>, %arg4: memref<8x128xf32, #tpu.memory_space<vmem>>, %arg5: memref<8x128xf32, #tpu.memory_space<vmem>>, %arg6: memref<8x128xf32, #tpu.memory_space<vmem>>) attributes {dimension_semantics = [#tpu.dimension_semantics<parallel>, #tpu.dimension_semantics<arbitrary>], iteration_bounds = array<i64: 2, 1>, scalar_prefetch = 0 : i64, scratch_operands = 0 : i64, tpu.core_type = #tpu.core_type<tc>, window_params = [{transform_indices = @transform_0, window_bounds = array<i64: 2, 2, 8, 128>}, {pipeline_mode = #tpu.pipeline_mode<synchronous>, transform_indices = @transform_1, window_bounds = array<i64: 128, 256>}, {transform_indices = @transform_2, window_bounds = array<i64: 8, 128>}, {transform_indices = @transform_3, window_bounds = array<i64: 8, 128>}, {transform_indices = @transform_4, window_bounds = array<i64: 8, 128>}]} {
    %c0_i32 = arith.constant 0 : i32
    %0 = arith.cmpi eq, %arg1, %c0_i32 : i32
    %1 = arith.extui %0 : i1 to i32
    %c0_i32_0 = arith.constant 0 : i32
    %2 = arith.cmpi ne, %1, %c0_i32_0 : i32
    scf.if %2 {
      %cst_22 = arith.constant 0.000000e+00 : f32
      %38 = vector.broadcast %cst_22 : f32 to vector<8x128xf32>
      %c0_23 = arith.constant 0 : index
      %c0_24 = arith.constant 0 : index
      %39 = vector.load %arg4[%c0_23, %c0_24] : memref<8x128xf32, #tpu.memory_space<vmem>>, vector<8x128xf32>
      tpu.vector_store %arg4[%c0_23, %c0_24], %38 {strides = array<i32>} : memref<8x128xf32, #tpu.memory_space<vmem>>, vector<8x128xf32>,
      %cst_25 = arith.constant 0.000000e+00 : f32
      %40 = vector.broadcast %cst_25 : f32 to vector<8x128xf32>
      %c0_26 = arith.constant 0 : index
      %c0_27 = arith.constant 0 : index
      %41 = vector.load %arg5[%c0_26, %c0_27] : memref<8x128xf32, #tpu.memory_space<vmem>>, vector<8x128xf32>
      tpu.vector_store %arg5[%c0_26, %c0_27], %40 {strides = array<i32>} : memref<8x128xf32, #tpu.memory_space<vmem>>, vector<8x128xf32>,
      %cst_28 = arith.constant 0.000000e+00 : f32
      %42 = vector.broadcast %cst_28 : f32 to vector<8x128xf32>
      %c0_29 = arith.constant 0 : index
      %c0_30 = arith.constant 0 : index
      %43 = vector.load %arg6[%c0_29, %c0_30] : memref<8x128xf32, #tpu.memory_space<vmem>>, vector<8x128xf32>
      tpu.vector_store %arg6[%c0_29, %c0_30], %42 {strides = array<i32>} : memref<8x128xf32, #tpu.memory_space<vmem>>, vector<8x128xf32>,
    } else {
    }
    %c0 = arith.constant 0 : index
    %c0_1 = arith.constant 0 : index
    %c0_2 = arith.constant 0 : index
    %c0_3 = arith.constant 0 : index
    %3 = vector.load %arg2[%c0, %c0_1, %c0_2, %c0_3] : memref<2x2x8x128xbf16, #tpu.memory_space<vmem>>, vector<2x2x8x128xbf16>
    %4 = vector.shape_cast %3 : vector<2x2x8x128xbf16> to vector<32x128xbf16>
    %c0_4 = arith.constant 0 : index
    %c0_5 = arith.constant 0 : index
    %5 = vector.load %arg3[%c0_4, %c0_5] : memref<128x256xbf16, #tpu.memory_space<vmem>>, vector<128x256xbf16>
    %cst = arith.constant dense<0.000000e+00> : vector<32x256xf32>
    %6 = tpu.matmul %4, %5, %cst {dimension_numbers = #tpu.dot_dimension_numbers<[1], [0], [0], [1], [0, 0, 1, 1], [], []>} : vector<32x128xbf16>, vector<128x256xbf16>, vector<32x256xf32> -> vector<32x256xf32>
    %7 = vector.extract_strided_slice %6 {offsets = [0, 0], sizes = [32, 128], strides = [1, 1]} : vector<32x256xf32> to vector<32x128xf32>
    %8 = vector.extract_strided_slice %6 {offsets = [0, 128], sizes = [32, 128], strides = [1, 1]} : vector<32x256xf32> to vector<32x128xf32>
    %9 = arith.mulf %7, %7 : vector<32x128xf32>
    %10 = arith.mulf %8, %8 : vector<32x128xf32>
    %11 = arith.addf %9, %10 : vector<32x128xf32>
    %cst_6 = arith.constant 9.99999993E-9 : f32
    %12 = vector.broadcast %cst_6 : f32 to vector<32x128xf32>
    %13 = arith.maximumf %11, %12 : vector<32x128xf32>
    %14 = vector.extract_strided_slice %13 {offsets = [0, 0], sizes = [16, 128], strides = [1, 1]} : vector<32x128xf32> to vector<16x128xf32>
    %15 = vector.extract_strided_slice %13 {offsets = [16, 0], sizes = [16, 128], strides = [1, 1]} : vector<32x128xf32> to vector<16x128xf32>
    %16 = math.sqrt %14 : vector<16x128xf32>
    %17 = math.sqrt %15 : vector<16x128xf32>
    %18 = arith.subf %17, %16 : vector<16x128xf32>
    %19 = arith.divf %17, %16 : vector<16x128xf32>
    %20 = math.log %19 : vector<16x128xf32>
    %21 = math.absf %20 : vector<16x128xf32>
    %c0_7 = arith.constant 0 : index
    %c0_8 = arith.constant 0 : index
    %22 = vector.load %arg4[%c0_7, %c0_8] : memref<8x128xf32, #tpu.memory_space<vmem>>, vector<8x128xf32>
    %23 = arith.mulf %18, %18 : vector<16x128xf32>
    %24 = vector.shape_cast %23 : vector<16x128xf32> to vector<2x8x128xf32>
    %cst_9 = arith.constant dense<0.000000e+00> : vector<8x128xf32>
    %25 = vector.multi_reduction <add>, %24, %cst_9 [0] : vector<2x8x128xf32> to vector<8x128xf32>
    %26 = arith.addf %22, %25 : vector<8x128xf32>
    %c0_10 = arith.constant 0 : index
    %c0_11 = arith.constant 0 : index
    %27 = vector.load %arg4[%c0_10, %c0_11] : memref<8x128xf32, #tpu.memory_space<vmem>>, vector<8x128xf32>
    tpu.vector_store %arg4[%c0_10, %c0_11], %26 {strides = array<i32>} : memref<8x128xf32, #tpu.memory_space<vmem>>, vector<8x128xf32>,
    %c0_12 = arith.constant 0 : index
    %c0_13 = arith.constant 0 : index
    %28 = vector.load %arg5[%c0_12, %c0_13] : memref<8x128xf32, #tpu.memory_space<vmem>>, vector<8x128xf32>
    %29 = vector.shape_cast %15 : vector<16x128xf32> to vector<2x8x128xf32>
    %cst_14 = arith.constant dense<0.000000e+00> : vector<8x128xf32>
    %30 = vector.multi_reduction <add>, %29, %cst_14 [0] : vector<2x8x128xf32> to vector<8x128xf32>
    %31 = arith.addf %28, %30 : vector<8x128xf32>
    %c0_15 = arith.constant 0 : index
    %c0_16 = arith.constant 0 : index
    %32 = vector.load %arg5[%c0_15, %c0_16] : memref<8x128xf32, #tpu.memory_space<vmem>>, vector<8x128xf32>
    tpu.vector_store %arg5[%c0_15, %c0_16], %31 {strides = array<i32>} : memref<8x128xf32, #tpu.memory_space<vmem>>, vector<8x128xf32>,
    %c0_17 = arith.constant 0 : index
    %c0_18 = arith.constant 0 : index
    %33 = vector.load %arg6[%c0_17, %c0_18] : memref<8x128xf32, #tpu.memory_space<vmem>>, vector<8x128xf32>
    %34 = vector.shape_cast %21 : vector<16x128xf32> to vector<2x8x128xf32>
    %cst_19 = arith.constant dense<0.000000e+00> : vector<8x128xf32>
    %35 = vector.multi_reduction <add>, %34, %cst_19 [0] : vector<2x8x128xf32> to vector<8x128xf32>
    %36 = arith.addf %33, %35 : vector<8x128xf32>
    %c0_20 = arith.constant 0 : index
    %c0_21 = arith.constant 0 : index
    %37 = vector.load %arg6[%c0_20, %c0_21] : memref<8x128xf32, #tpu.memory_space<vmem>>, vector<8x128xf32>
    tpu.vector_store %arg6[%c0_20, %c0_21], %36 {strides = array<i32>} : memref<8x128xf32, #tpu.memory_space<vmem>>, vector<8x128xf32>,
    return
  }
  func.func @transform_0(%arg0: i32, %arg1: i32) -> (i32, i32, i32, i32) {
    %c0_i32 = arith.constant 0 : i32
    %c0_i32_0 = arith.constant 0 : i32
    %c0_i32_1 = arith.constant 0 : i32
    return %c0_i32, %arg0, %arg1, %c0_i32_0 : i32, i32, i32, i32
  }
  func.func @transform_1(%arg0: i32, %arg1: i32) -> (i32, i32) {
    %c0_i32 = arith.constant 0 : i32
    %c0_i32_0 = arith.constant 0 : i32
    %c0_i32_1 = arith.constant 0 : i32
    return %c0_i32, %c0_i32_0 : i32, i32
  }
  func.func @transform_2(%arg0: i32, %arg1: i32) -> (i32, i32) {
    %c0_i32 = arith.constant 0 : i32
    %c0_i32_0 = arith.constant 0 : i32
    return %arg0, %c0_i32 : i32, i32
  }
  func.func @transform_3(%arg0: i32, %arg1: i32) -> (i32, i32) {
    %c0_i32 = arith.constant 0 : i32
    %c0_i32_0 = arith.constant 0 : i32
    return %arg0, %c0_i32 : i32, i32
  }
  func.func @transform_4(%arg0: i32, %arg1: i32) -> (i32, i32) {
    %c0_i32 = arith.constant 0 : i32
    %c0_i32_0 = arith.constant 0 : i32
    return %arg0, %c0_i32 : i32, i32
  }
}

</mosaic_0001>

<bundles_post_ra>
// kernel: multi_resolution_stft_loss.2
= control target key start
LH: loop header
LB: loop body
LE: loop exit
PB: predicated region body
PF: predicated region fallthrough
CT: control target
= control target key end

     0   :  { %s935_s15 = smov 0   ;;  %s937_s16 = smov 0   ;;  %s1064_s0 = inlined_call_operand.vmem [shape: bf16[2,4,16,64], index: 0, kind: input, shape index: {}]   ;;  %s1065_s1 = inlined_call_operand.vmem [shape: bf16[64,128], index: 1, kind: input, shape index: {}]   ;;  %s1066_s2 = inlined_call_operand.vmem [shape: f32[16,128], index: 2, kind: output, shape index: {0}]   ;;  %s1067_s3 = inlined_call_operand.vmem [shape: f32[16,128], index: 3, kind: output, shape index: {1}]   ;;  %s1068_s4 = inlined_call_operand.vmem [shape: f32[16,128], index: 4, kind: output, shape index: {2}]  }
   0x1   :  { %s939_s17 = smov 0   ;;  %s941_s18 = smov 0  }
   0x2   :  { %s943_s19 = smov 0  }
   0x3 LB: > { %s27_s20 = sadd.s32 1, %s903_s18  ;;  %p43_p1 = scmp.ne.s32.totalorder %s895_s16, %s891_s15  ;;  %s907_s19 = sphi %s943_s19, %s15_s19   ;;  %s903_s18 = sphi %s941_s18, %s1072_s18   ;;  %s899_s17 = sphi %s939_s17, %s1071_s17   ;;  %s895_s16 = sphi %s937_s16, %s1070_s16   ;;  %s891_s15 = sphi %s935_s15, %s1069_s15  }
   0x4   : > { %p29_p0 = scmp.ge.s32.totalorder %s27_s20, 2  ;;  %p44_p2 = scmp.eq.s32.totalorder %s907_s19, 0 }
   0x5   : > { %s36_s22 = sadd.s32 1, %s895_s16  ;;  %p729_p5 = scmp.ge.s32.totalorder %s907_s19, 2 }
   0x6   : > { %s1074_s20 = smov (%p29_p0, %s27_s20), 0  ;;  %p45_p3 = por %p44_p2, %p43_p1 }
   0x7   : > { %s31_s21 = ssub.s32 %s903_s18, %s1074_s20  ;;  %171 = sbr.rel (%p729_p5) target bundleno = 21 (0x15), region = 20 }
   0x8   : > { %p34_p4 = scmp.eq.s32.totalorder %s31_s21, 0 }
   0xa   : > { %s970_s23 = scalar_select %p34_p4, %s895_s16, %s36_s22  }
   0xe   : > { %174 = sbr.rel (!%p45_p3) target bundleno = 21 (0x15), region = 24  ;;  %s176_s24 = sand.u32 (%p45_p3), 1, %s895_s16  }
   0xf   : > { %s754_s25 = sshll.u32 (%p45_p3), %s903_s18, 4  ;;  %s730_s26 = sshll.u32 (%p45_p3), %s176_s24, 5 }
  0x10   : > { %s184_s29 = scalar_lea.vmem (%p45_p3), %s1064_s0, %s754_s25  ;;  %s178_s30 = scalar_lea.vmem (%p45_p3), [#allocation2], %s730_s26 }
  0x11   : > { %v200_v0 = vld [vmem:[%s184_s29] sm:$0xff] (%p45_p3)   ;;  %v204_v1 = vld [vmem:[%s184_s29 + $0x8] sm:$0xff] (%p45_p3)  }
  0x12   : > { %v208_v2 = vld [vmem:[%s184_s29 + $0x20] sm:$0xff] (%p45_p3)   ;;  %201 = vst [vmem:[%s178_s30] sm:$0xff] (%p45_p3), %v200_v0   ;;  %205 = vst [vmem:[%s178_s30 + $0x8] sm:$0xff] (%p45_p3), %v204_v1   ;;  %v212_v3 = vld [vmem:[%s184_s29 + $0x28] sm:$0xff] (%p45_p3)  }
  0x13   : > { %209 = vst [vmem:[%s178_s30 + $0x10] sm:$0xff] (%p45_p3), %v208_v2   ;;  %213 = vst [vmem:[%s178_s30 + $0x18] sm:$0xff] (%p45_p3), %v212_v3  }
  0x15 PF: > { %p734_p6 = scmp.ge.s32.totalorder %s907_s19, 1  ;;  %p253_p7 = scmp.lt.s32.totalorder %s907_s19, 3 }
  0x17   : > { %p254_p8 = pnand %p734_p6, %p253_p7 }
  0x18   : > { %v829_v4 = vld [vmem:[%s1065_s1] sm:$0xff] (!%p254_p8)   ;;  %s260_s7 = sand.u32 (!%p254_p8), 1, %s891_s15   ;;  %v830_v5 = vld [vmem:[%s1065_s1 + $0x8] sm:$0xff] (!%p254_p8)   ;;  %v831_v6 = vld [vmem:[%s1065_s1 + $0x10] sm:$0xff] (!%p254_p8)   ;;  %vm374_vm0 = vcmask (!%p254_p8), 523264   ;;  %s909_s21 = smov (!%p254_p8), 64  }
  0x19   : > { %257 = sbr.rel (%p254_p8) target bundleno = 429 (0x1ad), region = 65  ;;  %s735_s10 = sshll.u32 (!%p254_p8), %s260_s7, 5  ;;  %763 = vmatprep.subr.bf16.mxu0 (!%p254_p8), %v829_v4  ;;  %779 = vmatprep.subr.bf16.mxu1 (!%p254_p8), %v829_v4  ;;  %v832_v9 = vld [vmem:[%s1065_s1 + $0x18] sm:$0xff] (!%p254_p8)  }
  0x1a   : > { %764 = vmatpush3.bf16.msra.mxu0 (!%p254_p8), %v829_v4  ;;  %783 = vmatpush3.bf16.msra.mxu1 (!%p254_p8), %v829_v4  ;;  %s262_s13 = scalar_lea.vmem (!%p254_p8), [#allocation2], %s735_s10  ;;  %p294_p9 = scmp.lt.s32.totalorder (!%p254_p8), %s899_s17, 1 }
  0x1b   : > { %765 = vmatprep.subr.bf16.mxu0 (!%p254_p8), %v830_v5  ;;  %780 = vmatprep.subr.bf16.mxu1 (!%p254_p8), %v830_v5  ;;  %v833_v7 = vld [vmem:[%s262_s13] sm:$0xff] (!%p254_p8)   ;;  %v835_v8 = vld [vmem:[%s262_s13 + $0x10] sm:$0xff] (!%p254_p8)   ;;  %v834_v10 = vld [vmem:[%s262_s13 + $0x8] sm:$0xff] (!%p254_p8)  }
  0x1c   : > { %771 = vmatprep.mubr.msk.bf16.mxu0 (!%p254_p8), %vm374_vm0, %v833_v7  ;;  %775 = vmatprep.mubr.msk.bf16.mxu1 (!%p254_p8), %vm374_vm0, %v835_v8  ;;  %v836_v11 = vld [vmem:[%s262_s13 + $0x18] sm:$0xff] (!%p254_p8)  }
  0x1e   : > { %766 = vmatpush3.bf16.msra.mxu0 (!%p254_p8), %v830_v5  ;;  %784 = vmatpush3.bf16.msra.mxu1 (!%p254_p8), %v830_v5 }
  0x1f   : > { %767 = vmatprep.subr.bf16.mxu0 (!%p254_p8), %v831_v6  ;;  %781 = vmatprep.subr.bf16.mxu1 (!%p254_p8), %v831_v6 }
  0x20   : > { %s1076_s17 = smov (!%p294_p9, %s899_s17), 1 }
  0x21   : > { %s1012_s22 = sshll.u32 %s1076_s17, 3 }
  0x22   : > { %768 = vmatpush3.bf16.msra.mxu0 %v831_v6  ;;  %785 = vmatpush3.bf16.msra.mxu1 %v831_v6  ;;  %s301_s25 = scalar_lea.vmem %s1067_s3, %s1012_s22  ;;  %s297_s28 = scalar_lea.vmem %s1066_s2, %s1012_s22 }
  0x23   : > { %769 = vmatprep.subr.bf16.mxu0 %v832_v9  ;;  %782 = vmatprep.subr.bf16.mxu1 %v832_v9  ;;  %s305_s5 = scalar_lea.vmem %s1068_s4, %s1012_s22 }
  0x26   : > { %770 = vmatpush3.bf16.msra.mxu0 %v832_v9  ;;  %786 = vmatpush3.bf16.msra.mxu1 %v832_v9 }
  0x29   : > { %772 = vmatmul.mubr.msk.bf16.vlgmr.msra.gmra.mrb[0].mxu0 %vm374_vm0, %v834_v10  ;;  %776 = vmatmul.mubr.msk.bf16.vlgmr.msra.gmra.mrb[0].mxu1 %vm374_vm0, %v836_v11 }
  0xfc   : > { %v773_v12 = vpop.f32.mrb[0].mxu0  ;;  %v777_v13 = vpop.f32.mrb[0].mxu1 }
  0xfd   : > { %v454_v14 = vmul.f32 %v773_v12, %v773_v12  ;;  %v421_v15 = vpop.f32.mrb[1].mxu0  ;;  %v437_v16 = vpop.f32.mrb[1].mxu1  ;;  %v458_v27 = vmul.f32 %v777_v13, %v777_v13 }
  0xfe   : > { %v452_v17 = vmul.f32 %v421_v15, %v421_v15  ;;  %v774_v18 = vpop.f32.mrb[2].mxu0  ;;  %v778_v19 = vpop.f32.mrb[2].mxu1  ;;  %v456_v25 = vmul.f32 %v437_v16, %v437_v16 }
  0xff   : > { %464 = vrot.lane.b32.xlu1 %v454_v14, %s909_s21  ;;  %v424_v20 = vpop.f32.mrb[3].mxu0  ;;  %v440_v21 = vpop.f32.mrb[3].mxu1  ;;  %v455_v22 = vmul.f32 %v774_v18, %v774_v18  ;;  %v459_v26 = vmul.f32 %v778_v19, %v778_v19 }
 0x100   : > { %460 = vrot.lane.b32.xlu0 %v452_v17, %s909_s21  ;;  %v453_v23 = vmul.f32 %v424_v20, %v424_v20  ;;  %v457_v24 = vmul.f32 %v440_v21, %v440_v21 }
 0x103   : > { %466 = vrot.lane.b32.xlu1 %v455_v22, %s909_s21 }
 0x104   : > { %462 = vrot.lane.b32.xlu0 %v453_v23, %s909_s21 }
 0x107   : > { %470 = vrot.lane.b32.xlu1 %v457_v24, %s909_s21 }
 0x108   : > { %468 = vrot.lane.b32.xlu0 %v456_v25, %s909_s21 }
 0x10b   : > { %474 = vrot.lane.b32.xlu1 %v459_v26, %s909_s21 }
 0x10c   : > { %472 = vrot.lane.b32.xlu0 %v458_v27, %s909_s21 }
 0x171   : > { %v465_v28 = vpop.permute.xlu1 %464 }
 0x172   : > { %v478_v29 = vadd.f32 %v465_v28, %v454_v14  ;;  %v461_v30 = vpop.permute.xlu0 %460 }
 0x173   : > { %v476_v31 = vadd.f32 %v461_v30, %v452_v17 }
 0x174   : > { %v486_v32 = vmax.f32 %v478_v29, 1e-08 }
 0x175   : > { %v484_v33 = vmax.f32 %v476_v31, 1e-08  ;;  %v467_v34 = vpop.permute.xlu1 %466 }
 0x176   : > { %837 = vrsqrt.f32 %v486_v32  ;;  %v463_v35 = vpop.permute.xlu0 %462  ;;  %v479_v36 = vadd.f32 %v467_v34, %v455_v22  ;;  %vm508_vm1 = vcmp.eq.f32.partialorder %v486_v32, inf  ;;  %v511_v59 = vand.u32 2147483648, %v486_v32 }
 0x177   : > { %839 = vrsqrt.f32 %v484_v33  ;;  %v477_v37 = vadd.f32 %v463_v35, %v453_v23  ;;  %vm494_vm2 = vcmp.eq.f32.partialorder %v484_v33, inf  ;;  %v497_v55 = vand.u32 2147483648, %v484_v33 }
 0x178   : > { %v487_v39 = vmax.f32 %v479_v36, 1e-08  ;;  %vm496_vm3 = vcmp.eq.f32.partialorder %v484_v33, 0.0  ;;  %vm510_vm4 = vcmp.eq.f32.partialorder %v486_v32, 0.0 }
 0x179   : > { %v471_v38 = vpop.permute.xlu1 %470  ;;  %v485_v40 = vmax.f32 %v477_v37, 1e-08 }
 0x17a   : > { %v481_v41 = vadd.f32 %v471_v38, %v457_v24  ;;  %v469_v42 = vpop.permute.xlu0 %468  ;;  %841 = vrsqrt.f32 %v487_v39  ;;  %vm515_vm5 = vcmp.eq.f32.partialorder %v487_v39, inf  ;;  %vm517_vm6 = vcmp.eq.f32.partialorder %v487_v39, 0.0 }
 0x17b   : > { %v480_v43 = vadd.f32 %v469_v42, %v456_v25  ;;  %843 = vrsqrt.f32 %v485_v40  ;;  %v518_v3 = vand.u32 2147483648, %v487_v39  ;;  %vm501_vm7 = vcmp.eq.f32.partialorder %v485_v40, inf }
 0x17c   : > { %v997_v45 = vmax.f32 %v481_v41, 1e-08  ;;  %v504_v6 = vand.u32 2147483648, %v485_v40  ;;  %vm503_vm8 = vcmp.eq.f32.partialorder %v485_v40, 0.0 }
 0x17d   : > { %v475_v44 = vpop.permute.xlu1 %474  ;;  %v999_v46 = vmax.f32 %v480_v43, 1e-08 }
 0x17e   : > { %v483_v47 = vadd.f32 %v475_v44, %v459_v26  ;;  %v473_v48 = vpop.permute.xlu0 %472  ;;  %845 = vrsqrt.f32 %v997_v45  ;;  %vm529_vm9 = vcmp.eq.f32.partialorder %v997_v45, inf  ;;  %v532_v14 = vand.u32 2147483648, %v997_v45 }
 0x17f   : > { %v482_v49 = vadd.f32 %v473_v48, %v458_v27  ;;  %847 = vrsqrt.f32 %v999_v46  ;;  %v583_v61 = vadd.f32 %v997_v45, %v999_v46  ;;  %vm531_vm10 = vcmp.eq.f32.partialorder %v997_v45, 0.0 }
 0x180   : > { %v838_v50 = vpop.eup %837  ;;  %v1004_v54 = vmax.f32 %v483_v47, 1e-08  ;;  %vm522_vm11 = vcmp.eq.f32.partialorder %v999_v46, inf  ;;  %v525_v17 = vand.u32 2147483648, %v999_v46  ;;  %vm524_vm12 = vcmp.eq.f32.partialorder %v999_v46, 0.0 }
 0x181   : > { %v840_v51 = vpop.eup %839  ;;  %v507_v52 = vmul.f32 %v838_v50, %v486_v32  ;;  %v1007_v56 = vmax.f32 %v482_v49, 1e-08 }
 0x182   : > { %v493_v53 = vmul.f32 %v840_v51, %v484_v33  ;;  %849 = vrsqrt.f32 %v1004_v54  ;;  %vm543_vm13 = vcmp.eq.f32.partialorder %v1004_v54, inf  ;;  %v546_v29 = vand.u32 2147483648, %v1004_v54 }
 0x183   : > { %v509_v57 = vsel %vm508_vm1, %v486_v32, %v507_v52  ;;  %v584_v2 = vadd.f32 %v583_v61, %v1007_v56  ;;  %vm545_vm14 = vcmp.eq.f32.partialorder %v1004_v54, 0.0  ;;  %vm536_vm15 = vcmp.eq.f32.partialorder %v1007_v56, inf }
 0x184   : > { %v495_v58 = vsel %vm494_vm2, %v484_v33, %v493_v53  ;;  %v842_v62 = vpop.eup %841  ;;  %v512_v0 = vsel %vm510_vm4, %v511_v59, %v509_v57  ;;  %v539_v32 = vand.u32 2147483648, %v1007_v56  ;;  %vm538_vm0 = vcmp.eq.f32.partialorder %v1007_v56, 0.0 }
 0x185   : > { %v498_v60 = vsel %vm496_vm3, %v497_v55, %v495_v58  ;;  %v844_v63 = vpop.eup %843  ;;  %v514_v1 = vmul.f32 %v842_v62, %v487_v39  ;;  %v585_v7 = vadd.f32 %v584_v2, %v1004_v54 }
 0x186   : > { %851 = vrcp.f32 %v498_v60  ;;  %v500_v4 = vmul.f32 %v844_v63, %v485_v40 }
 0x187   : > { %853 = vrsqrt.f32 %v1007_v56  ;;  %v516_v5 = vsel %vm515_vm5, %v487_v39, %v514_v1  ;;  %587 = vst [vmem:[%s301_s25] sm:$0xff] %v585_v7 }
 0x188   : > { %v846_v8 = vpop.eup %845  ;;  %855 = vrcp.f32 %v512_v0  ;;  %v519_v9 = vsel %vm517_vm6, %v518_v3, %v516_v5  ;;  %v502_v10 = vsel %vm501_vm7, %v485_v40, %v500_v4 }
 0x189   : > { %v848_v11 = vpop.eup %847  ;;  %857 = vrcp.f32 %v519_v9  ;;  %v505_v12 = vsel %vm503_vm8, %v504_v6, %v502_v10  ;;  %v528_v13 = vmul.f32 %v846_v8, %v997_v45 }
 0x18a   : > { %859 = vrcp.f32 %v505_v12  ;;  %v521_v15 = vmul.f32 %v848_v11, %v999_v46 }
 0x18b   : > { %v530_v16 = vsel %vm529_vm9, %v997_v45, %v528_v13 }
 0x18c   : > { %v850_v18 = vpop.eup %849  ;;  %v533_v19 = vsel %vm531_vm10, %v532_v14, %v530_v16  ;;  %v523_v20 = vsel %vm522_vm11, %v999_v46, %v521_v15 }
 0x18d   : > { %v526_v21 = vsel %vm524_vm12, %v525_v17, %v523_v20  ;;  %v542_v22 = vmul.f32 %v850_v18, %v1004_v54  ;;  %v549_v24 = vsub.f32 %v533_v19, %v505_v12 }
 0x18e   : > { %v548_v25 = vsub.f32 %v526_v21, %v498_v60 }
 0x18f   : > { %v544_v28 = vsel %vm543_vm13, %v1004_v54, %v542_v22  ;;  %v574_v34 = vmul.f32 %v549_v24, %v549_v24 }
 0x190   : > { %v852_v23 = vpop.eup %851  ;;  %v547_v31 = vsel %vm545_vm14, %v546_v29, %v544_v28  ;;  %v573_v35 = vmul.f32 %v548_v25, %v548_v25 }
 0x191   : > { %v854_v26 = vpop.eup %853  ;;  %v553_v27 = vmul.f32 %v852_v23, %v526_v21  ;;  %v551_v40 = vsub.f32 %v547_v31, %v519_v9 }
 0x192   : > { %v535_v30 = vmul.f32 %v854_v26, %v1007_v56  ;;  %v856_v33 = vpop.eup %855  ;;  %v577_v45 = vadd.f32 %v574_v34, %v573_v35 }
 0x193   : > { %v858_v37 = vpop.eup %857  ;;  %861 = vlog2.f32 %v553_v27  ;;  %v576_v47 = vmul.f32 %v551_v40, %v551_v40 }
 0x194   : > { %v537_v36 = vsel %vm536_vm15, %v1007_v56, %v535_v30  ;;  %v860_v39 = vpop.eup %859  ;;  %v559_v41 = vmul.f32 %v858_v37, %v547_v31 }
 0x195   : > { %v540_v38 = vsel %vm538_vm0, %v539_v32, %v537_v36  ;;  %v555_v44 = vmul.f32 %v860_v39, %v533_v19 }
 0x196   : > { %v550_v42 = vsub.f32 %v540_v38, %v512_v0  ;;  %v557_v43 = vmul.f32 %v856_v33, %v540_v38  ;;  %863 = vlog2.f32 %v559_v41 }
 0x197   : > { %865 = vlog2.f32 %v555_v44 }
 0x198   : > { %v575_v46 = vmul.f32 %v550_v42, %v550_v42  ;;  %867 = vlog2.f32 %v557_v43 }
 0x19a   : > { %v578_v48 = vadd.f32 %v577_v45, %v575_v46 }
 0x19c   : > { %v579_v49 = vadd.f32 %v578_v48, %v576_v47 }
 0x19d   : > { %v862_v50 = vpop.eup %861 }
 0x19e   : > { %581 = vst [vmem:[%s297_s28] sm:$0xff] %v579_v49  ;;  %v561_v52 = vmul.f32 0.6931472, %v862_v50 }
 0x1a0   : > { %v864_v51 = vpop.eup %863  ;;  %v568_v58 = vand.u32 2147483647, %v561_v52 }
 0x1a1   : > { %v866_v53 = vpop.eup %865  ;;  %v567_v59 = vmul.f32 0.6931472, %v864_v51 }
 0x1a2   : > { %v868_v54 = vpop.eup %867  ;;  %v563_v55 = vmul.f32 0.6931472, %v866_v53 }
 0x1a3   : > { %v565_v56 = vmul.f32 0.6931472, %v868_v54  ;;  %v571_v62 = vand.u32 2147483647, %v567_v59 }
 0x1a4   : > { %v569_v57 = vand.u32 2147483647, %v563_v55 }
 0x1a5   : > { %v570_v61 = vand.u32 2147483647, %v565_v56 }
 0x1a6   : > { %v589_v60 = vadd.f32 %v569_v57, %v568_v58 }
 0x1a8   : > { %v590_v63 = vadd.f32 %v589_v60, %v570_v61 }
 0x1aa   : > { %v591_v0 = vadd.f32 %v590_v63, %v571_v62 }
 0x1ac   : > { %593 = vst [vmem:[%s305_s5] sm:$0xff] %v591_v0 }
 0x1ad PF: > { %s15_s19 = sadd.s32 1, %s907_s19   ;;  %s1069_s15 = smov %s895_s16 }
 0x1ae   : > { %p12_p10 = scmp.ge.s32.totalorder %s15_s19, 4   ;;  %s1070_s16 = smov %s970_s23 }
 0x1af   : > { %s1071_s17 = smov %s903_s18  ;;  %s1072_s18 = smov %s1074_s20 }
 0x1b0   :  { %14 = sbr.rel (!%p12_p10) target bundleno = 3 (0x3), region = 132 }

// kernel: multi_resolution_stft_loss.3
= control target key start
LH: loop header
LB: loop body
LE: loop exit
PB: predicated region body
PF: predicated region fallthrough
CT: control target
= control target key end

     0   :  { %s860_s15 = smov 0   ;;  %s862_s16 = smov 0   ;;  %s992_s0 = inlined_call_operand.vmem [shape: bf16[2,4,8,128], index: 0, kind: input, shape index: {}]   ;;  %s993_s1 = inlined_call_operand.vmem [shape: bf16[128,256], index: 1, kind: input, shape index: {}]   ;;  %s994_s2 = inlined_call_operand.vmem [shape: f32[16,128], index: 2, kind: output, shape index: {0}]   ;;  %s995_s3 = inlined_call_operand.vmem [shape: f32[16,128], index: 3, kind: output, shape index: {1}]   ;;  %s996_s4 = inlined_call_operand.vmem [shape: f32[16,128], index: 4, kind: output, shape index: {2}]  }
   0x1   :  { %s864_s17 = smov 0   ;;  %s866_s18 = smov 0  }
   0x2   :  { %s868_s19 = smov 0  }
   0x3 LB: > { %s27_s20 = sadd.s32 1, %s828_s18  ;;  %p43_p1 = scmp.ne.s32.totalorder %s820_s16, %s816_s15  ;;  %s832_s19 = sphi %s868_s19, %s15_s19   ;;  %s828_s18 = sphi %s866_s18, %s1000_s18   ;;  %s824_s17 = sphi %s864_s17, %s999_s17   ;;  %s820_s16 = sphi %s862_s16, %s998_s16   ;;  %s816_s15 = sphi %s860_s15, %s997_s15  }
   0x4   : > { %p29_p0 = scmp.ge.s32.totalorder %s27_s20, 2  ;;  %p44_p2 = scmp.eq.s32.totalorder %s832_s19, 0 }
   0x5   : > { %s36_s22 = sadd.s32 1, %s820_s16  ;;  %p664_p5 = scmp.ge.s32.totalorder %s832_s19, 2 }
   0x6   : > { %s1002_s20 = smov (%p29_p0, %s27_s20), 0  ;;  %p45_p3 = por %p44_p2, %p43_p1 }
   0x7   : > { %s31_s21 = ssub.s32 %s828_s18, %s1002_s20  ;;  %171 = sbr.rel (%p664_p5) target bundleno = 21 (0x15), region = 20 }
   0x8   : > { %p34_p4 = scmp.eq.s32.totalorder %s31_s21, 0 }
   0xa   : > { %s895_s23 = scalar_select %p34_p4, %s820_s16, %s36_s22  }
   0xe   : > { %174 = sbr.rel (!%p45_p3) target bundleno = 21 (0x15), region = 24  ;;  %s176_s24 = sand.u32 (%p45_p3), 1, %s820_s16  }
   0xf   : > { %s693_s25 = sshll.u32 (%p45_p3), %s828_s18, 3  ;;  %s665_s26 = sshll.u32 (%p45_p3), %s176_s24, 4 }
  0x10   : > { %s182_s29 = scalar_lea.vmem (%p45_p3), %s992_s0, %s693_s25  ;;  %s178_s30 = scalar_lea.vmem (%p45_p3), [#allocation2], %s665_s26 }
  0x11   : > { %v198_v0 = vld [vmem:[%s182_s29] sm:$0xff] (%p45_p3)   ;;  %v202_v1 = vld [vmem:[%s182_s29 + $0x10] sm:$0xff] (%p45_p3)  }
  0x12   : > { %199 = vst [vmem:[%s178_s30] sm:$0xff] (%p45_p3), %v198_v0   ;;  %203 = vst [vmem:[%s178_s30 + $0x8] sm:$0xff] (%p45_p3), %v202_v1  }
  0x15 PF: > { %p668_p6 = scmp.ge.s32.totalorder %s832_s19, 1  ;;  %p235_p7 = scmp.lt.s32.totalorder %s832_s19, 3 }
  0x17   : > { %p236_p8 = pnand %p668_p6, %p235_p7 }
  0x18   : > { %v752_v2 = vld [vmem:[%s993_s1 + $0x4] ss:$8 sps:$4 sm:$0xff] (!%p236_p8)   ;;  %v754_v3 = vld [vmem:[%s993_s1] ss:$8 sps:$4 sm:$0xff] (!%p236_p8)   ;;  %v834_v4 = vmov (!%p236_p8), 0   ;;  %s242_s13 = sand.u32 (!%p236_p8), 1, %s816_s15  }
  0x19   : > { %239 = sbr.rel (%p236_p8) target bundleno = 325 (0x145), region = 65  ;;  %439 = vmatprep.mubr.bf16.mxu0 (!%p236_p8), %v834_v4  ;;  %449 = vmatprep.mubr.bf16.mxu1 (!%p236_p8), %v834_v4  ;;  %v755_v5 = vld [vmem:[%s993_s1 + $0x14] ss:$8 sps:$4 sm:$0xff] (!%p236_p8)   ;;  %v757_v6 = vld [vmem:[%s993_s1 + $0x10] ss:$8 sps:$4 sm:$0xff] (!%p236_p8)   ;;  %s921_s22 = sshll.u32 (!%p236_p8), %s242_s13, 4 }
  0x1a   : > { %407 = vmatprep.subr.bf16.mxu0 (!%p236_p8), %v752_v2  ;;  %694 = vmatprep.subr.bf16.mxu1 (!%p236_p8), %v752_v2  ;;  %v758_v7 = vld [vmem:[%s993_s1 + $0x24] ss:$8 sps:$4 sm:$0xff] (!%p236_p8)   ;;  %v760_v8 = vld [vmem:[%s993_s1 + $0x20] ss:$8 sps:$4 sm:$0xff] (!%p236_p8)   ;;  %v761_v9 = vld [vmem:[%s993_s1 + $0x34] ss:$8 sps:$4 sm:$0xff] (!%p236_p8)  }
  0x1b   : > { %408 = vmatpush1.bf16.msra.mxu0 (!%p236_p8), %v754_v3  ;;  %702 = vmatpush1.bf16.msra.mxu1 (!%p236_p8), %v754_v3  ;;  %s244_s15 = scalar_lea.vmem (!%p236_p8), [#allocation2], %s921_s22  ;;  %v763_v10 = vld [vmem:[%s993_s1 + $0x30] ss:$8 sps:$4 sm:$0xff] (!%p236_p8)   ;;  %v764_v11 = vld [vmem:[%s993_s1 + $0x44] ss:$8 sps:$4 sm:$0xff] (!%p236_p8)   ;;  %p275_p9 = scmp.lt.s32.totalorder (!%p236_p8), %s824_s17, 1 }
  0x1c   : > { %409 = vmatprep.subr.bf16.mxu0 (!%p236_p8), %v755_v5  ;;  %695 = vmatprep.subr.bf16.mxu1 (!%p236_p8), %v755_v5  ;;  %v766_v12 = vld [vmem:[%s993_s1 + $0x40] ss:$8 sps:$4 sm:$0xff] (!%p236_p8)   ;;  %v767_v13 = vld [vmem:[%s993_s1 + $0x54] ss:$8 sps:$4 sm:$0xff] (!%p236_p8)   ;;  %v769_v14 = vld [vmem:[%s993_s1 + $0x50] ss:$8 sps:$4 sm:$0xff] (!%p236_p8)  }
  0x1d   : > { %v770_v15 = vld [vmem:[%s993_s1 + $0x64] ss:$8 sps:$4 sm:$0xff] (!%p236_p8)   ;;  %v772_v16 = vld [vmem:[%s993_s1 + $0x60] ss:$8 sps:$4 sm:$0xff] (!%p236_p8)   ;;  %v773_v17 = vld [vmem:[%s993_s1 + $0x74] ss:$8 sps:$4 sm:$0xff] (!%p236_p8)  }
  0x1e   : > { %v775_v18 = vld [vmem:[%s993_s1 + $0x70] ss:$8 sps:$4 sm:$0xff] (!%p236_p8)  }
  0x1f   : > { %410 = vmatpush1.bf16.msra.mxu0 (!%p236_p8), %v757_v6  ;;  %703 = vmatpush1.bf16.msra.mxu1 (!%p236_p8), %v757_v6  ;;  %v776_v19 = vld [vmem:[%s244_s15] sm:$0xff] (!%p236_p8)   ;;  %v777_v20 = vld [vmem:[%s244_s15 + $0x8] sm:$0xff] (!%p236_p8)  }
  0x20   : > { %411 = vmatprep.subr.bf16.mxu0 %v758_v7  ;;  %696 = vmatprep.subr.bf16.mxu1 %v758_v7  ;;  %s1004_s17 = smov (!%p275_p9, %s824_s17), 1 }
  0x21   : > { %s963_s22 = sshll.u32 %s1004_s17, 3 }
  0x22   : > { %s282_s29 = scalar_lea.vmem %s995_s3, %s963_s22  ;;  %s278_s5 = scalar_lea.vmem %s994_s2, %s963_s22 }
  0x23   : > { %412 = vmatpush1.bf16.msra.mxu0 %v760_v8  ;;  %704 = vmatpush1.bf16.msra.mxu1 %v760_v8  ;;  %s286_s8 = scalar_lea.vmem %s996_s4, %s963_s22 }
  0x24   : > { %413 = vmatprep.subr.bf16.mxu0 %v761_v9  ;;  %697 = vmatprep.subr.bf16.mxu1 %v761_v9 }
  0x27   : > { %414 = vmatpush1.bf16.msra.mxu0 %v763_v10  ;;  %705 = vmatpush1.bf16.msra.mxu1 %v763_v10 }
  0x28   : > { %415 = vmatprep.subr.bf16.mxu0 %v764_v11  ;;  %698 = vmatprep.subr.bf16.mxu1 %v764_v11 }
  0x2b   : > { %416 = vmatpush1.bf16.msra.mxu0 %v766_v12  ;;  %706 = vmatpush1.bf16.msra.mxu1 %v766_v12 }
  0x2c   : > { %417 = vmatprep.subr.bf16.mxu0 %v767_v13  ;;  %699 = vmatprep.subr.bf16.mxu1 %v767_v13 }
  0x2f   : > { %418 = vmatpush1.bf16.msra.mxu0 %v769_v14  ;;  %707 = vmatpush1.bf16.msra.mxu1 %v769_v14 }
  0x30   : > { %419 = vmatprep.subr.bf16.mxu0 %v770_v15  ;;  %700 = vmatprep.subr.bf16.mxu1 %v770_v15 }
  0x33   : > { %420 = vmatpush1.bf16.msra.mxu0 %v772_v16  ;;  %708 = vmatpush1.bf16.msra.mxu1 %v772_v16 }
  0x34   : > { %421 = vmatprep.subr.bf16.mxu0 %v773_v17  ;;  %701 = vmatprep.subr.bf16.mxu1 %v773_v17 }
  0x37   : > { %422 = vmatpush1.bf16.msra.mxu0 %v775_v18  ;;  %709 = vmatpush1.bf16.msra.mxu1 %v775_v18 }
  0x3a   : > { %440 = vmatmul.mubr.bf16.vlgmr.msra.gmra.mrb[0].mxu0 %v776_v19  ;;  %450 = vmatmul.mubr.bf16.vlgmr.msra.gmra.mrb[0].mxu1 %v777_v20 }
 0x10d   : > { %v441_v21 = vpop.f32.mrb[0].mxu0  ;;  %v451_v22 = vpop.f32.mrb[0].mxu1 }
 0x10e   : > { %v460_v23 = vmul.f32 %v441_v21, %v441_v21  ;;  %v462_v24 = vmul.f32 %v451_v22, %v451_v22  ;;  %v443_v25 = vpop.f32.mrb[1].mxu0  ;;  %v453_v26 = vpop.f32.mrb[1].mxu1 }
 0x10f   : > { %v464_v27 = vmul.f32 %v443_v25, %v443_v25  ;;  %v466_v28 = vmul.f32 %v453_v26, %v453_v26  ;;  %v445_v29 = vpop.f32.mrb[2].mxu0  ;;  %v455_v30 = vpop.f32.mrb[2].mxu1 }
 0x110   : > { %v461_v31 = vmul.f32 %v445_v29, %v445_v29  ;;  %v463_v32 = vmul.f32 %v455_v30, %v455_v30  ;;  %v447_v33 = vpop.f32.mrb[3].mxu0  ;;  %v457_v34 = vpop.f32.mrb[3].mxu1 }
 0x111   : > { %v468_v35 = vadd.f32 %v464_v27, %v460_v23  ;;  %v470_v36 = vadd.f32 %v466_v28, %v462_v24  ;;  %v465_v37 = vmul.f32 %v447_v33, %v447_v33  ;;  %v467_v38 = vmul.f32 %v457_v34, %v457_v34 }
 0x113   : > { %v472_v39 = vmax.f32 %v468_v35, 1e-08  ;;  %v474_v40 = vmax.f32 %v470_v36, 1e-08  ;;  %v469_v41 = vadd.f32 %v465_v37, %v461_v31  ;;  %v471_v42 = vadd.f32 %v467_v38, %v463_v32 }
 0x115   : > { %778 = vrsqrt.f32 %v472_v39  ;;  %v473_v43 = vmax.f32 %v469_v41, 1e-08  ;;  %v475_v44 = vmax.f32 %v471_v42, 1e-08  ;;  %vm478_vm0 = vcmp.eq.f32.partialorder %v472_v39, inf }
 0x116   : > { %780 = vrsqrt.f32 %v474_v40  ;;  %v481_v49 = vand.u32 2147483648, %v472_v39  ;;  %vm480_vm1 = vcmp.eq.f32.partialorder %v472_v39, 0.0  ;;  %vm492_vm2 = vcmp.eq.f32.partialorder %v474_v40, inf }
 0x117   : > { %782 = vrsqrt.f32 %v473_v43  ;;  %v523_v45 = vadd.f32 %v475_v44, %v474_v40  ;;  %v495_v52 = vand.u32 2147483648, %v474_v40  ;;  %vm494_vm3 = vcmp.eq.f32.partialorder %v474_v40, 0.0 }
 0x118   : > { %784 = vrsqrt.f32 %v475_v44  ;;  %vm485_vm4 = vcmp.eq.f32.partialorder %v473_v43, inf  ;;  %v488_v60 = vand.u32 2147483648, %v473_v43  ;;  %vm487_vm5 = vcmp.eq.f32.partialorder %v473_v43, 0.0 }
 0x119   : > { %525 = vst [vmem:[%s282_s29] sm:$0xff] %v523_v45  ;;  %vm499_vm6 = vcmp.eq.f32.partialorder %v475_v44, inf  ;;  %v502_v63 = vand.u32 2147483648, %v475_v44  ;;  %vm501_vm7 = vcmp.eq.f32.partialorder %v475_v44, 0.0 }
 0x11f   : > { %v779_v46 = vpop.eup %778 }
 0x120   : > { %v781_v47 = vpop.eup %780  ;;  %v477_v48 = vmul.f32 %v779_v46, %v472_v39 }
 0x121   : > { %v491_v50 = vmul.f32 %v781_v47, %v474_v40  ;;  %v783_v53 = vpop.eup %782 }
 0x122   : > { %v479_v51 = vsel %vm478_vm0, %v472_v39, %v477_v48  ;;  %v785_v56 = vpop.eup %784  ;;  %v484_v58 = vmul.f32 %v783_v53, %v473_v43 }
 0x123   : > { %v482_v54 = vsel %vm480_vm1, %v481_v49, %v479_v51  ;;  %v493_v55 = vsel %vm492_vm2, %v474_v40, %v491_v50  ;;  %v498_v61 = vmul.f32 %v785_v56, %v475_v44 }
 0x124   : > { %786 = vrcp.f32 %v482_v54  ;;  %v496_v57 = vsel %vm494_vm3, %v495_v52, %v493_v55  ;;  %v486_v62 = vsel %vm485_vm4, %v473_v43, %v484_v58 }
 0x125   : > { %v504_v59 = vsub.f32 %v496_v57, %v482_v54  ;;  %v489_v0 = vsel %vm487_vm5, %v488_v60, %v486_v62  ;;  %v500_v1 = vsel %vm499_vm6, %v475_v44, %v498_v61 }
 0x126   : > { %788 = vrcp.f32 %v489_v0  ;;  %v503_v2 = vsel %vm501_vm7, %v502_v63, %v500_v1 }
 0x127   : > { %v505_v3 = vsub.f32 %v503_v2, %v489_v0  ;;  %v517_v4 = vmul.f32 %v504_v59, %v504_v59 }
 0x129   : > { %v518_v5 = vmul.f32 %v505_v3, %v505_v3 }
 0x12b   : > { %v519_v6 = vadd.f32 %v518_v5, %v517_v4 }
 0x12d   : > { %521 = vst [vmem:[%s278_s5] sm:$0xff] %v519_v6 }
 0x12e   : > { %v787_v7 = vpop.eup %786 }
 0x12f   : > { %v507_v8 = vmul.f32 %v787_v7, %v496_v57 }
 0x130   : > { %v789_v9 = vpop.eup %788 }
 0x131   : > { %790 = vlog2.f32 %v507_v8  ;;  %v509_v10 = vmul.f32 %v789_v9, %v503_v2 }
 0x133   : > { %792 = vlog2.f32 %v509_v10 }
 0x13b   : > { %v791_v11 = vpop.eup %790 }
 0x13c   : > { %v511_v12 = vmul.f32 0.6931472, %v791_v11 }
 0x13d   : > { %v793_v13 = vpop.eup %792 }
 0x13e   : > { %v513_v14 = vmul.f32 0.6931472, %v793_v13  ;;  %v514_v15 = vand.u32 2147483647, %v511_v12 }
 0x140   : > { %v515_v16 = vand.u32 2147483647, %v513_v14 }
 0x142   : > { %v527_v17 = vadd.f32 %v515_v16, %v514_v15 }
 0x144   : > { %529 = vst [vmem:[%s286_s8] sm:$0xff] %v527_v17 }
 0x145 PF: > { %s15_s19 = sadd.s32 1, %s832_s19   ;;  %s997_s15 = smov %s820_s16 }
 0x146   : > { %p12_p10 = scmp.ge.s32.totalorder %s15_s19, 4   ;;  %s998_s16 = smov %s895_s23 }
 0x147   : > { %s999_s17 = smov %s828_s18  ;;  %s1000_s18 = smov %s1002_s20 }
 0x148   :  { %14 = sbr.rel (!%p12_p10) target bundleno = 3 (0x3), region = 132 }

</bundles_post_ra>
